<compile_context>
chip_gen: v5e
topology: v5e:2x2
jax: 0.10.0
libtpu: 0.0.40
codegen_flags: <defaults>
</compile_context>

<pallas_src>
import jax
import jax.numpy as jnp
from jax.experimental import pallas as pl
from jax.experimental.pallas import tpu as pltpu

_LANES = 512          # wide, multiple of 128 -> unmasked full-width stores
_MAX_ROW_TILE = 512   # 512 x 512 f32 tile = 1 MiB; 4 MiB double-buffered in+out


def _identity_kernel(x_ref, o_ref):
    # BaseVAE.forward is abstract; the base-class-faithful forward is identity.
    o_ref[...] = x_ref[...]


def _sublane_multiple(dtype) -> int:
    # Minimum second-minor tile grain: 8 for 4-byte, 16 for 2-byte, 32 for 1-byte.
    itemsize = jnp.dtype(dtype).itemsize
    return 8 * max(1, 4 // itemsize)


def _padded_layout(n_elem: int, dtype):
    """Return (padded_rows, row_tile) for a lane-dense (rows, _LANES) slab."""
    sub = _sublane_multiple(dtype)
    rows = -(-n_elem // _LANES)          # ceil-div to lane width
    rows = -(-rows // sub) * sub         # round rows up to sublane grain
    tr = min(_MAX_ROW_TILE, rows)        # row tile (multiple of sublane grain)
    rows = -(-rows // tr) * tr           # pad rows to a whole number of tiles
    return rows, tr


def _forward_2d(x2d: jax.Array, tr: int) -> jax.Array:
    rows, lanes = x2d.shape
    return pl.pallas_call(
        _identity_kernel,
        out_shape=jax.ShapeDtypeStruct((rows, lanes), x2d.dtype),
        grid=(rows // tr,),
        in_specs=[pl.BlockSpec((tr, lanes), lambda i: (i, 0))],
        out_specs=pl.BlockSpec((tr, lanes), lambda i: (i, 0)),
        # Output aliases the input buffer: no second HBM allocation for the
        # identity forward.
        input_output_aliases={0: 0},
        compiler_params=pltpu.CompilerParams(
            dimension_semantics=("parallel",),      # shard rows across TCs (v7x)
            vmem_limit_bytes=32 * 1024 * 1024,      # safe on v5e/v6e/v7x
        ),
    )(x2d)


@jax.jit
def base_vae_forward(x: jax.Array) -> jax.Array:
    """Concrete Pallas realization of BaseVAE.forward(*inputs) -> inputs[0].

    Accepts any NCHW (or arbitrary-shaped) tensor; flattens to a lane-dense
    2-D slab padded to the (sublane, 128*k) tile grain, runs the row-tiled
    identity kernel, and restores the original shape.
    """
    orig_shape = x.shape
    flat = x.reshape(-1)
    n = flat.shape[0]
    rows, tr = _padded_layout(n, x.dtype)
    padded = rows * _LANES
    if padded != n:
        flat = jnp.pad(flat, (0, padded - n))
    x2d = flat.reshape(rows, _LANES)
    out2d = _forward_2d(x2d, tr)
    return out2d.reshape(-1)[:n].reshape(orig_shape)


# TODO(synk): BaseVAE.encode is abstract (raises NotImplementedError) — no kernel.
# TODO(synk): BaseVAE.decode is abstract (raises NotImplementedError) — no kernel.
# TODO(synk): BaseVAE.sample raises RuntimeError in the reference — no kernel.
# TODO(synk): BaseVAE.generate is abstract (raises NotImplementedError) — no kernel.
# TODO(synk): BaseVAE.loss_function is abstract — no kernel.


if __name__ == "__main__":
    key = jax.random.PRNGKey(0)
    # Small NCHW input consistent with a VAE image input: batch=2, channels=4,
    # spatial 16x16.
    x = jax.random.normal(key, (2, 4, 16, 16), dtype=jnp.float32)

    y = base_vae_forward(x)
    jax.block_until_ready(y)

    # forward of the (abstract) base class is identity on its input.
    assert y.shape == x.shape and y.dtype == x.dtype
    assert bool(jnp.allclose(y, x))

    print("KERNEL_OK")
</pallas_src>

<mosaic_0001>
module attributes {stable_mosaic.version = 11 : i64} {
  func.func @_identity_kernel(%arg0: i32, %arg1: memref<8x512xf32, #tpu.memory_space<vmem>>, %arg2: memref<8x512xf32, #tpu.memory_space<vmem>>) attributes {dimension_semantics = [#tpu.dimension_semantics<parallel>], iteration_bounds = array<i64: 1>, scalar_prefetch = 0 : i64, scratch_operands = 0 : i64, tpu.core_type = #tpu.core_type<tc>, window_params = [{transform_indices = @transform_0, window_bounds = array<i64: 8, 512>}, {transform_indices = @transform_1, window_bounds = array<i64: 8, 512>}]} {
    %c0 = arith.constant 0 : index
    %c0_0 = arith.constant 0 : index
    %0 = vector.load %arg1[%c0, %c0_0] : memref<8x512xf32, #tpu.memory_space<vmem>>, vector<8x512xf32>
    %c0_1 = arith.constant 0 : index
    %c0_2 = arith.constant 0 : index
    %1 = vector.load %arg2[%c0_1, %c0_2] : memref<8x512xf32, #tpu.memory_space<vmem>>, vector<8x512xf32>
    tpu.vector_store %arg2[%c0_1, %c0_2], %0 {strides = array<i32>} : memref<8x512xf32, #tpu.memory_space<vmem>>, vector<8x512xf32>,
    return
  }
  func.func @transform_0(%arg0: i32) -> (i32, i32) {
    %c0_i32 = arith.constant 0 : i32
    %c0_i32_0 = arith.constant 0 : i32
    return %arg0, %c0_i32 : i32, i32
  }
  func.func @transform_1(%arg0: i32) -> (i32, i32) {
    %c0_i32 = arith.constant 0 : i32
    %c0_i32_0 = arith.constant 0 : i32
    return %arg0, %c0_i32 : i32, i32
  }
}

</mosaic_0001>

<bundles_post_ra>
// kernel: base_vae_forward.1
= control target key start
LH: loop header
LB: loop body
LE: loop exit
PB: predicated region body
PF: predicated region fallthrough
CT: control target
= control target key end

     0   :  { %s54_s0 = inlined_call_operand.vmem [shape: f32[8,512], index: 0, kind: input, shape index: {}, may-alias: {0,1}]   ;;  %s55_s1 = inlined_call_operand.vmem [shape: f32[8,512], index: 1, kind: output, shape index: {}, may-alias: {0,1}]  }
   0x1   :  { %v8_v0 = vld [vmem:[%s54_s0] sm:$0xff]  ;;  %v9_v1 = vld [vmem:[%s54_s0 + $0x8] sm:$0xff]  ;;  %v10_v2 = vld [vmem:[%s54_s0 + $0x10] sm:$0xff] }
   0x2   :  { %12 = vst [vmem:[%s55_s1] sm:$0xff] %v8_v0 }
   0x9   :  { %v11_v3 = vld [vmem:[%s54_s0 + $0x18] sm:$0xff] }
   0xa   :  { %13 = vst [vmem:[%s55_s1 + $0x8] sm:$0xff] %v9_v1 }
   0xb   :  { %14 = vst [vmem:[%s55_s1 + $0x10] sm:$0xff] %v10_v2 }
   0xc   :  { %15 = vst [vmem:[%s55_s1 + $0x18] sm:$0xff] %v11_v3 }

</bundles_post_ra>
